<compile_context>
chip_gen: v7x
topology: tpu7x:2x2x1
jax: 0.10.0
libtpu: 0.0.40
codegen_flags: <defaults>
</compile_context>

<pallas_src>
import functools
import math

import jax
import jax.numpy as jnp
from jax.experimental import pallas as pl
from jax.experimental.pallas import tpu as pltpu


VMEM_LIMIT = 32 * 1024 * 1024   # conservative across v5e/v6e/v7x
NEG_INF = -1e9                  # same fill value as the PyTorch module


def _round_up(a, m):
    return (a + m - 1) // m * m


# ---------------------------------------------------------------------------
# Tiled Linear: y = x @ W + b   (W stored as (in, out) == PyTorch weight.T)
# ---------------------------------------------------------------------------
def _linear_kernel_f32(x_ref, w_ref, b_ref, o_ref):
    # f32 output: accumulate straight into the (resident) output block, no scratch.
    k = pl.program_id(2)

    @pl.when(k == 0)
    def _():
        o_ref[...] = jnp.broadcast_to(b_ref[...].astype(jnp.float32), o_ref.shape)

    o_ref[...] += jnp.dot(x_ref[...], w_ref[...], preferred_element_type=jnp.float32)


def _linear_kernel_lowp(x_ref, w_ref, b_ref, o_ref, acc_ref):
    # Low-precision output: keep an f32 VMEM accumulator, cast at finalize.
    k = pl.program_id(2)

    @pl.when(k == 0)
    def _():
        acc_ref[...] = jnp.zeros_like(acc_ref)

    acc_ref[...] += jnp.dot(x_ref[...], w_ref[...], preferred_element_type=jnp.float32)

    @pl.when(k == pl.num_programs(2) - 1)
    def _():
        o_ref[...] = (acc_ref[...] + b_ref[...].astype(jnp.float32)).astype(o_ref.dtype)


def linear_forward(x2d, w, b, *, tm=512, tn=512, tk=512):
    """x2d: (M, K); w: (K, N); b: (N,) -> (M, N)."""
    M, K = x2d.shape
    _, N = w.shape

    tm = min(tm, _round_up(M, 8))      # sublane granularity
    tn = min(tn, _round_up(N, 128))    # lane granularity
    tk = min(tk, _round_up(K, 128))

    Mp, Np, Kp = _round_up(M, tm), _round_up(N, tn), _round_up(K, tk)
    xp = jnp.pad(x2d, ((0, Mp - M), (0, Kp - K)))
    wp = jnp.pad(w, ((0, Kp - K), (0, Np - N)))
    bp = jnp.pad(b, (0, Np - N)).reshape(1, Np)

    if x2d.dtype == jnp.float32:
        kernel, scratch = _linear_kernel_f32, []
    else:
        kernel, scratch = _linear_kernel_lowp, [pltpu.VMEM((tm, tn), jnp.float32)]

    out = pl.pallas_call(
        kernel,
        out_shape=jax.ShapeDtypeStruct((Mp, Np), x2d.dtype),
        grid_spec=pltpu.PrefetchScalarGridSpec(
            num_scalar_prefetch=0,
            grid=(Mp // tm, Np // tn, Kp // tk),
            in_specs=[
                pl.BlockSpec((tm, tk), lambda i, j, k: (i, k)),
                pl.BlockSpec((tk, tn), lambda i, j, k: (k, j)),
                pl.BlockSpec((1, tn), lambda i, j, k: (0, j)),
            ],
            out_specs=pl.BlockSpec((tm, tn), lambda i, j, k: (i, j)),
            scratch_shapes=scratch,
        ),
        compiler_params=pltpu.CompilerParams(
            dimension_semantics=("parallel", "parallel", "arbitrary"),
            vmem_limit_bytes=VMEM_LIMIT,
        ),
    )(xp, wp, bp)
    return out[:M, :N]


# ---------------------------------------------------------------------------
# Flash-style attention, all heads fused per (batch, q-tile) block.
# ---------------------------------------------------------------------------
def _mha_attn_kernel(state_ref, bias_ref, q_ref, k_ref, v_ref, o_ref,
                     m_sc, l_sc, acc_sc, *, scale, n_head, dk, d_model, d_pad):
    b = pl.program_id(0)
    qi = pl.program_id(1)
    ki = pl.program_id(2)
    nq = pl.num_programs(1)
    nk = pl.num_programs(2)

    @pl.when(ki == 0)
    def _():
        m_sc[...] = jnp.full_like(m_sc, -jnp.inf)
        l_sc[...] = jnp.zeros_like(l_sc)
        acc_sc[...] = jnp.zeros_like(acc_sc)

    # 0 = fully masked kv tile (skip), 1 = partial, 2 = full (bias is all-zero anyway).
    state = state_ref[(b * nq + qi) * nk + ki]

    @pl.when(state > 0)
    def _compute():
        bias = bias_ref[0]                  # (tq, tkv) additive f32 mask (0 / -1e9)
        q_all = q_ref[0] * scale            # scale q (tq x d_pad), not every score matrix
        k_all = k_ref[0]
        v_all = v_ref[0]
        tq = q_all.shape[0]

        for h in range(n_head):             # static head loop over dk-wide column groups
            lo = h * dk
            q_h = q_all[:, lo:lo + dk]
            k_h = k_all[:, lo:lo + dk]
            v_h = v_all[:, lo:lo + dk]

            s = jax.lax.dot_general(q_h, k_h, (((1,), (1,)), ((), ())),
                                    preferred_element_type=jnp.float32) + bias

            m_prev = m_sc[:, lo:lo + 1]
            l_prev = l_sc[:, lo:lo + 1]
            m_new = jnp.maximum(m_prev, s.max(axis=-1, keepdims=True))
            alpha = jnp.exp(m_prev - m_new)
            p = jnp.exp(s - m_new)
            l_new = alpha * l_prev + p.sum(axis=-1, keepdims=True)

            pv = jnp.dot(p.astype(v_h.dtype), v_h, preferred_element_type=jnp.float32)
            acc_sc[:, lo:lo + dk] = alpha * acc_sc[:, lo:lo + dk] + pv
            # Stats are stored replicated across the head's dk columns so the finalize
            # normalization is one dense (tq, d_pad) multiply + one lane-dense store.
            m_sc[:, lo:lo + dk] = jnp.broadcast_to(m_new, (tq, dk))
            l_sc[:, lo:lo + dk] = jnp.broadcast_to(l_new, (tq, dk))

    @pl.when(ki == nk - 1)
    def _():
        # Clamp guards padded / fully-skipped rows (l == 0) against inf * 0.
        inv_l = pl.reciprocal(jnp.maximum(l_sc[...], 1e-30), approx=True)
        o_ref[0] = (acc_sc[...] * inv_l).astype(o_ref.dtype)


def attention_forward(q_arr, k_arr, v_arr, cols, bias_mask, *,
                      n_head, d_model, d_pad, tq, tkv):
    """q_arr: (B,Sq_p,*); k_arr/v_arr: (B,Sk_p,*); bias_mask: (B,Sq_p,Sk_p) f32 additive."""
    B, Sq_p = q_arr.shape[0], q_arr.shape[1]
    Sk_p = k_arr.shape[1]
    nq, nk = Sq_p // tq, Sk_p // tkv
    dk = d_model // n_head
    scale = 1.0 / math.sqrt(dk)
    cq, ck, cv = cols

    # Per-(b, q-tile, kv-tile) block state from the mask (wrapper-side, one pass).
    tile_on = (bias_mask == 0.0).astype(jnp.int32).reshape(
        B, nq, tq, nk, tkv).sum(axis=(2, 4))
    full = tq * tkv
    state = jnp.where(tile_on == 0, 0,
                      jnp.where(tile_on == full, 2, 1)).astype(jnp.int32).reshape(-1)

    kernel = functools.partial(_mha_attn_kernel, scale=scale, n_head=n_head,
                               dk=dk, d_model=d_model, d_pad=d_pad)

    out = pl.pallas_call(
        kernel,
        out_shape=jax.ShapeDtypeStruct((B, Sq_p, d_pad), q_arr.dtype),
        grid_spec=pltpu.PrefetchScalarGridSpec(
            num_scalar_prefetch=1,
            grid=(B, nq, nk),
            in_specs=[
                pl.BlockSpec((1, tq, tkv), lambda b, qi, ki, st: (b, qi, ki)),
                pl.BlockSpec((1, tq, d_pad), lambda b, qi, ki, st, c=cq: (b, qi, c)),
                pl.BlockSpec((1, tkv, d_pad), lambda b, qi, ki, st, c=ck: (b, ki, c)),
                pl.BlockSpec((1, tkv, d_pad), lambda b, qi, ki, st, c=cv: (b, ki, c)),
            ],
            out_specs=pl.BlockSpec((1, tq, d_pad),
                                   lambda b, qi, ki, st: (b, qi, 0)),
            scratch_shapes=[
                pltpu.VMEM((tq, d_pad), jnp.float32),   # running max (per-head replicated)
                pltpu.VMEM((tq, d_pad), jnp.float32),   # running sum-exp
                pltpu.VMEM((tq, d_pad), jnp.float32),   # output accumulator
            ],
        ),
        compiler_params=pltpu.CompilerParams(
            dimension_semantics=("parallel", "parallel", "arbitrary"),
            vmem_limit_bytes=VMEM_LIMIT,
        ),
    )(state, bias_mask, q_arr, k_arr, v_arr)
    return out


# ---------------------------------------------------------------------------
# Helpers: fused / padded projection parameters, tile selection
# ---------------------------------------------------------------------------
def _fused_qkv_params(params, d_model, d_pad):
    w = jnp.zeros((d_model, 3 * d_pad), params["wq"].dtype)
    w = w.at[:, 0:d_model].set(params["wq"])
    w = w.at[:, d_pad:d_pad + d_model].set(params["wk"])
    w = w.at[:, 2 * d_pad:2 * d_pad + d_model].set(params["wv"])
    b = jnp.zeros((3 * d_pad,), params["bq"].dtype)
    b = b.at[0:d_model].set(params["bq"])
    b = b.at[d_pad:d_pad + d_model].set(params["bk"])
    b = b.at[2 * d_pad:2 * d_pad + d_model].set(params["bv"])
    return w, b


def _pad_out_features(w, b, d_pad):
    d_out = w.shape[1]
    return jnp.pad(w, ((0, 0), (0, d_pad - d_out))), jnp.pad(b, (0, d_pad - d_out))


def _attn_tiles(Sq, Sk, shared):
    """Returns (tq, tkv, Sq_p, Sk_p). `shared` => q and kv read the same padded array."""
    if shared:
        if Sq <= 256:
            t = _round_up(Sq, 8)
            return t, t, t, t
        s_p = _round_up(Sq, 256)
        return 128, 256, s_p, s_p
    tq = min(128, _round_up(Sq, 8))
    tkv = _round_up(Sk, 8) if Sk <= 256 else 256
    return tq, tkv, _round_up(Sq, tq), _round_up(Sk, tkv)


# ---------------------------------------------------------------------------
# Full MultiHeadedAttention forward
# ---------------------------------------------------------------------------
def mha_forward(q, k, v, params, n_head, mask=None):
    """q,k,v: (B, S, d_model); params: (d_model,d_model) weights (stored as weight.T) / biases."""
    B, Sq, D = q.shape
    Sk = k.shape[1]
    assert D % n_head == 0
    Dp = _round_up(D, 128)                          # per-segment lane-aligned width

    self_attn = (q is k) and (k is v)
    tq, tkv, Sq_p, Sk_p = _attn_tiles(Sq, Sk, self_attn)

    # Additive mask bias (0 keep / -1e9 drop); broadcast over heads like the PyTorch module.
    if mask is None:
        keep = jnp.ones((B, Sq, Sk), dtype=jnp.float32)
    else:
        keep = (jnp.broadcast_to(mask, (B, Sq, Sk)) != 0).astype(jnp.float32)
    bias = jnp.where(keep > 0, 0.0, NEG_INF).astype(jnp.float32)
    bias = jnp.pad(bias, ((0, 0), (0, Sq_p - Sq), (0, Sk_p - Sk)),
                   constant_values=NEG_INF)         # padded rows/cols fully masked

    if self_attn:
        # Fused QKV projection: input streamed once, output (B, S_p, 3*Dp) read in place.
        xq = jnp.pad(q, ((0, 0), (0, Sq_p - Sq), (0, 0)))
        w_qkv, b_qkv = _fused_qkv_params(params, D, Dp)
        qkv = linear_forward(xq.reshape(-1, D), w_qkv, b_qkv).reshape(B, Sq_p, 3 * Dp)
        q_arr = k_arr = v_arr = qkv
        cols = (0, 1, 2)                             # Q / K / V segment block indices
    else:
        def project(x, w, b, s_pad):
            xp = jnp.pad(x, ((0, 0), (0, s_pad - x.shape[1]), (0, 0)))
            wp, bp = _pad_out_features(w, b, Dp)
            return linear_forward(xp.reshape(-1, D), wp, bp).reshape(B, s_pad, Dp)

        q_arr = project(q, params["wq"], params["bq"], Sq_p)
        k_arr = project(k, params["wk"], params["bk"], Sk_p)
        v_arr = project(v, params["wv"], params["bv"], Sk_p)
        cols = (0, 0, 0)

    ctx = attention_forward(q_arr, k_arr, v_arr, cols, bias,
                            n_head=n_head, d_model=D, d_pad=Dp, tq=tq, tkv=tkv)
    # ctx is (B, Sq_p, Dp) already in (B, S, H*dk) layout -> "concat heads" is free.
    wo_p = jnp.pad(params["wo"], ((0, Dp - D), (0, 0)))
    out2d = linear_forward(ctx.reshape(B * Sq_p, Dp), wo_p, params["bo"])
    return out2d.reshape(B, Sq_p, D)[:, :Sq, :]


# ---------------------------------------------------------------------------
# Pure-JAX reference (mirrors the PyTorch module, dropout in eval mode)
# ---------------------------------------------------------------------------
def mha_reference(q, k, v, params, n_head, mask=None):
    B, Sq, D = q.shape
    Sk = k.shape[1]
    dk = D // n_head

    def lin(x, w, b):
        return x @ w + b

    def split(x):
        return x.reshape(B, -1, n_head, dk).transpose(0, 2, 1, 3)

    Q = split(lin(q, params["wq"], params["bq"]))
    K = split(lin(k, params["wk"], params["bk"]))
    V = split(lin(v, params["wv"], params["bv"]))

    s = jnp.einsum("bhqd,bhkd->bhqk", Q, K) / math.sqrt(dk)
    if mask is not None:
        m = jnp.broadcast_to(mask, (B, Sq, Sk))
        s = jnp.where(m[:, None, :, :] == 0, NEG_INF, s)
    p = jax.nn.softmax(s, axis=-1)
    ctx = jnp.einsum("bhqk,bhkd->bhqd", p, V)
    ctx = ctx.transpose(0, 2, 1, 3).reshape(B, Sq, D)
    return lin(ctx, params["wo"], params["bo"])


if __name__ == "__main__":
    batch, seq, n_head, d_model = 2, 8, 4, 32

    key = jax.random.PRNGKey(0)
    keys = jax.random.split(key, 12)

    x = jax.random.normal(keys[0], (batch, seq, d_model), dtype=jnp.float32)

    def make_linear(kw, kb):
        w = jax.random.normal(kw, (d_model, d_model), dtype=jnp.float32) * 0.1
        b = jax.random.normal(kb, (d_model,), dtype=jnp.float32) * 0.1
        return w, b

    wq, bq = make_linear(keys[3], keys[4])
    wk, bk = make_linear(keys[5], keys[6])
    wv, bv = make_linear(keys[7], keys[8])
    wo, bo = make_linear(keys[9], keys[10])
    params = dict(wq=wq, bq=bq, wk=wk, bk=bk, wv=wv, bv=bv, wo=wo, bo=bo)

    # (1) Self-attention with a causal mask -> fused QKV path + block-skip state table.
    mask = jnp.broadcast_to(
        jnp.tril(jnp.ones((seq, seq), dtype=jnp.int32)), (batch, seq, seq))
    out = jax.block_until_ready(mha_forward(x, x, x, params, n_head, mask=mask))
    ref = mha_reference(x, x, x, params, n_head, mask=mask)
    assert out.shape == (batch, seq, d_model)
    assert jnp.allclose(out, ref, atol=2e-3, rtol=2e-3), \
        f"self-attn max abs err {jnp.max(jnp.abs(out - ref))}"

    # (2) Cross-attention (distinct q / memory, no mask) -> general projection path.
    seq_kv = 16
    q_in = jax.random.normal(keys[1], (batch, seq, d_model), dtype=jnp.float32)
    kv_in = jax.random.normal(keys[2], (batch, seq_kv, d_model), dtype=jnp.float32)
    out2 = jax.block_until_ready(mha_forward(q_in, kv_in, kv_in, params, n_head, mask=None))
    ref2 = mha_reference(q_in, kv_in, kv_in, params, n_head, mask=None)
    assert out2.shape == (batch, seq, d_model)
    assert jnp.allclose(out2, ref2, atol=2e-3, rtol=2e-3), \
        f"cross-attn max abs err {jnp.max(jnp.abs(out2 - ref2))}"

    print("KERNEL_OK")
</pallas_src>

<mosaic_0001>
module attributes {stable_mosaic.version = 11 : i64} {
  func.func @_linear_kernel_f32(%arg0: i32, %arg1: i32, %arg2: i32, %arg3: memref<16x128xf32, #tpu.memory_space<vmem>>, %arg4: memref<128x384xf32, #tpu.memory_space<vmem>>, %arg5: memref<1x384xf32, #tpu.memory_space<vmem>>, %arg6: memref<16x384xf32, #tpu.memory_space<vmem>>) attributes {dimension_semantics = [#tpu.dimension_semantics<parallel>, #tpu.dimension_semantics<parallel>, #tpu.dimension_semantics<arbitrary>], iteration_bounds = array<i64: 1, 1, 1>, scalar_prefetch = 0 : i64, scratch_operands = 0 : i64, tpu.core_type = #tpu.core_type<tc>, window_params = [{transform_indices = @transform_0, window_bounds = array<i64: 16, 128>}, {transform_indices = @transform_1, window_bounds = array<i64: 128, 384>}, {transform_indices = @transform_2, window_bounds = array<i64: 1, 384>}, {transform_indices = @transform_3, window_bounds = array<i64: 16, 384>}]} {
    %c0_i32 = arith.constant 0 : i32
    %0 = arith.cmpi eq, %arg2, %c0_i32 : i32
    %1 = arith.extui %0 : i1 to i32
    %c0_i32_0 = arith.constant 0 : i32
    %2 = arith.cmpi ne, %1, %c0_i32_0 : i32
    scf.if %2 {
      %c0_8 = arith.constant 0 : index
      %c0_9 = arith.constant 0 : index
      %9 = vector.load %arg5[%c0_8, %c0_9] : memref<1x384xf32, #tpu.memory_space<vmem>>, vector<1x384xf32>
      %10 = vector.shape_cast %9 : vector<1x384xf32> to vector<1x384xf32>
      %11 = vector.broadcast %10 : vector<1x384xf32> to vector<16x384xf32>
      %c0_10 = arith.constant 0 : index
      %c0_11 = arith.constant 0 : index
      %12 = vector.load %arg6[%c0_10, %c0_11] : memref<16x384xf32, #tpu.memory_space<vmem>>, vector<16x384xf32>
      tpu.vector_store %arg6[%c0_10, %c0_11], %11 {strides = array<i32>} : memref<16x384xf32, #tpu.memory_space<vmem>>, vector<16x384xf32>,
    } else {
    }
    %c0 = arith.constant 0 : index
    %c0_1 = arith.constant 0 : index
    %3 = vector.load %arg6[%c0, %c0_1] : memref<16x384xf32, #tpu.memory_space<vmem>>, vector<16x384xf32>
    %c0_2 = arith.constant 0 : index
    %c0_3 = arith.constant 0 : index
    %4 = vector.load %arg3[%c0_2, %c0_3] : memref<16x128xf32, #tpu.memory_space<vmem>>, vector<16x128xf32>
    %c0_4 = arith.constant 0 : index
    %c0_5 = arith.constant 0 : index
    %5 = vector.load %arg4[%c0_4, %c0_5] : memref<128x384xf32, #tpu.memory_space<vmem>>, vector<128x384xf32>
    %cst = arith.constant dense<0.000000e+00> : vector<16x384xf32>
    %6 = tpu.matmul %4, %5, %cst {dimension_numbers = #tpu.dot_dimension_numbers<[1], [0], [0], [1], [0, 0, 1, 1], [], []>} : vector<16x128xf32>, vector<128x384xf32>, vector<16x384xf32> -> vector<16x384xf32>
    %7 = arith.addf %3, %6 : vector<16x384xf32>
    %c0_6 = arith.constant 0 : index
    %c0_7 = arith.constant 0 : index
    %8 = vector.load %arg6[%c0_6, %c0_7] : memref<16x384xf32, #tpu.memory_space<vmem>>, vector<16x384xf32>
    tpu.vector_store %arg6[%c0_6, %c0_7], %7 {strides = array<i32>} : memref<16x384xf32, #tpu.memory_space<vmem>>, vector<16x384xf32>,
    return
  }
  func.func @transform_0(%arg0: i32, %arg1: i32, %arg2: i32) -> (i32, i32) {
    %c0_i32 = arith.constant 0 : i32
    return %arg0, %arg2 : i32, i32
  }
  func.func @transform_1(%arg0: i32, %arg1: i32, %arg2: i32) -> (i32, i32) {
    %c0_i32 = arith.constant 0 : i32
    return %arg2, %arg1 : i32, i32
  }
  func.func @transform_2(%arg0: i32, %arg1: i32, %arg2: i32) -> (i32, i32) {
    %c0_i32 = arith.constant 0 : i32
    %c0_i32_0 = arith.constant 0 : i32
    return %c0_i32, %arg1 : i32, i32
  }
  func.func @transform_3(%arg0: i32, %arg1: i32, %arg2: i32) -> (i32, i32) {
    %c0_i32 = arith.constant 0 : i32
    return %arg0, %arg1 : i32, i32
  }
}

</mosaic_0001>

<bundles_post_ra>
// kernel: tpu_custom_call.1
= control target key start
LH: loop header
LB: loop body
LE: loop exit
PB: predicated region body
PF: predicated region fallthrough
CT: control target
= control target key end

     0   :  { %8 = vsyncpa [#allocation3], 0  ;;  %s580_s0 = inlined_call_operand.hbm [shape: f32[16,128], index: 0, kind: input, shape index: {}]   ;;  %s581_s1 = inlined_call_operand.hbm [shape: f32[128,384], index: 1, kind: input, shape index: {}]   ;;  %s582_s2 = inlined_call_operand.vmem [shape: f32[1,384], index: 2, kind: input, shape index: {}]   ;;  %s583_s3 = inlined_call_operand.hbm [shape: f32[16,384], index: 3, kind: output, shape index: {}]  }
   0x1   :  { %9 = vsyncpa [#allocation6], 0 }
   0x2   :  { %10 = vsyncpa [#allocation4], 0  ;;  %s505_s12 = smov [#allocation2]   ;;  %s433_s16 = scalar_lea.hbm %s580_s0, 256 }
   0x3   :  { %s16_s13 = sshll.u32 %s505_s12, 4  ;;  %p434_p0 = scmp.ne.s32.totalorder %s580_s0, %s433_s16  ;;  %s17_s13 = int_to_ptr.vmem [resolvable:$true] %s16_s13 }
   0x4   :  { %p437_p1 = scmp.lt.u32.totalorder %s433_s16, %s580_s0 }
   0x6   :  { %p439_p2 = pnand %p437_p1, %p434_p0 }
   0x8   :  { %442 = shalt.err (!%p439_p2)
}
   0x9   :  { %s443_s21 = scalar_lea.vmem %s17_s13, 256  ;;  %p448_p4 = scmp.lt.s32.totalorder %s17_s13, %s17_s13 }
   0xa   :  { %p444_p3 = scmp.ne.s32.totalorder %s17_s13, %s443_s21  ;;  %p449_p5 = scmp.lt.s32.totalorder %s443_s21, %s443_s21 }
   0xc   :  { %p450_p6 = por %p449_p5, %p448_p4 }
   0xe   :  { %p451_p7 = pnand %p450_p6, %p444_p3 }
  0x10   :  { %454 = shalt.err (!%p451_p7)
}
  0x11   :  { %s506_s22 = smov 128   ;;  %s507_s23 = smov 8  }
  0x12   :  { %22 = dma.hbm_to_vmem [thread:$0]  %s580_s0, 256, %s17_s13, [#allocation3], %s506_s22, %s506_s22, %s507_s23  }
  0x13   :  { %s508_s26 = smov [#allocation5]   ;;  %s455_s30 = scalar_lea.hbm %s581_s1, 6144 }
  0x14   :  { %s28_s27 = sshll.u32 %s508_s26, 4  ;;  %p456_p8 = scmp.ne.s32.totalorder %s581_s1, %s455_s30  ;;  %s29_s27 = int_to_ptr.vmem [resolvable:$true] %s28_s27 }
  0x15   :  { %p459_p9 = scmp.lt.u32.totalorder %s455_s30, %s581_s1 }
  0x17   :  { %p461_p10 = pnand %p459_p9, %p456_p8 }
  0x19   :  { %464 = shalt.err (!%p461_p10)
}
  0x1a   :  { %s465_s8 = scalar_lea.vmem %s29_s27, 6144  ;;  %p470_p12 = scmp.lt.s32.totalorder %s29_s27, %s29_s27 }
  0x1b   :  { %p466_p11 = scmp.ne.s32.totalorder %s29_s27, %s465_s8  ;;  %p471_p13 = scmp.lt.s32.totalorder %s465_s8, %s465_s8 }
  0x1d   :  { %p472_p0 = por %p471_p13, %p470_p12 }
  0x1f   :  { %p473_p1 = pnand %p472_p0, %p466_p11 }
  0x21   :  { %476 = shalt.err (!%p473_p1)
}
  0x22   :  { %s509_s0 = smov 384   ;;  %s510_s9 = smov 24  }
  0x23   :  { %34 = dma.hbm_to_vmem [thread:$0]  %s581_s1, 6144, %s29_s27, [#allocation6], %s509_s0, %s509_s0, %s510_s9  }
  0x24   :  { %499 = dma.done.wait [#allocation3], 256  }
  0x25   :  { %500 = vsyncadd [#allocation3], 4294967040 }
  0x26   :  { %501 = dma.done.wait [#allocation6], 6144  }
  0x27   :  { %502 = vsyncadd [#allocation6], 4294961152  ;;  %v511_v0 = vmov 0.0   ;;  %v79_v1 = vld [vmem:[#allocation5 + $0x8] sm:$0xff]  ;;  %v82_v2 = vld [vmem:[#allocation5 + $0x20] sm:$0xff]  ;;  %s512_s13 = smov [#allocation7]  }
  0x28   :  { %190 = vmatprep.mubr.f32.mxu0 %v511_v0  ;;  %v78_v3 = vld [vmem:[#allocation5] sm:$0xff]  ;;  %v361_v4 = vpack.c.bf16 %v82_v2, %v79_v1  ;;  %v81_v5 = vld [vmem:[#allocation5 + $0x18] sm:$0xff]  ;;  %v80_v6 = vld [vmem:[#allocation5 + $0x10] sm:$0xff]  ;;  %s295_s14 = sshll.u32 %s512_s13, 4  ;;  %s296_s14 = int_to_ptr.vmem [resolvable:$true] %s295_s14 }
  0x29   :  { %v83_v7 = vld [vmem:[#allocation5 + $0x28] sm:$0xff]  ;;  %v363_v8 = vpack.c.bf16 %v81_v5, %v78_v3  ;;  %v85_v10 = vld [vmem:[#allocation5 + $0x38] sm:$0xff]  ;;  %v88_v11 = vld [vmem:[#allocation5 + $0x50] sm:$0xff]  ;;  %p482_p3 = scmp.lt.s32.totalorder %s296_s14, %s296_s14 }
  0x2a   :  { %v393_v9 = vpack.c.bf16 %v83_v7, %v80_v6  ;;  %v84_v12 = vld [vmem:[#allocation5 + $0x30] sm:$0xff]  ;;  %362 = vmatprep.subr.bf16.mxu0 %v361_v4  ;;  %v365_v13 = vpack.c.bf16 %v88_v11, %v85_v10  ;;  %v87_v14 = vld [vmem:[#allocation5 + $0x48] sm:$0xff]  ;;  %v86_v15 = vld [vmem:[#allocation5 + $0x40] sm:$0xff] }
  0x2b   :  { %v89_v16 = vld [vmem:[#allocation5 + $0x58] sm:$0xff]  ;;  %364 = vmatpush1.bf16.msra.mxu0 %v363_v8  ;;  %v367_v17 = vpack.c.bf16 %v87_v14, %v84_v12  ;;  %v91_v19 = vld [vmem:[#allocation5 + $0x68] sm:$0xff]  ;;  %v94_v20 = vld [vmem:[#allocation5 + $0x80] sm:$0xff]  ;;  %v49_v12 = vlaneseq }
  0x2c   :  { %394 = vmatprep.subr.bf16.mxu1 %v393_v9  ;;  %v397_v18 = vpack.c.bf16 %v89_v16, %v86_v15  ;;  %v90_v21 = vld [vmem:[#allocation5 + $0x60] sm:$0xff]  ;;  %366 = vmatprep.subr.bf16.mxu0 %v365_v13  ;;  %v369_v22 = vpack.c.bf16 %v94_v20, %v91_v19  ;;  %v93_v23 = vld [vmem:[#allocation5 + $0x78] sm:$0xff]  ;;  %v92_v24 = vld [vmem:[#allocation5 + $0x70] sm:$0xff] }
  0x2d   :  { %396 = vmatpush3.bf16.msra.mxu1 %v393_v9  ;;  %v95_v25 = vld [vmem:[#allocation5 + $0x88] sm:$0xff]  ;;  %v97_v27 = vld [vmem:[#allocation5 + $0x98] sm:$0xff]  ;;  %v100_v28 = vld [vmem:[#allocation5 + $0xb0] sm:$0xff]  ;;  %v371_v31 = vpack.c.bf16 %v93_v23, %v90_v21  ;;  %v50_v13 = vshrl.u32 %v49_v12, 7 }
  0x2e   :  { %398 = vmatprep.subr.bf16.mxu1 %v397_v18  ;;  %v401_v26 = vpack.c.bf16 %v95_v25, %v92_v24  ;;  %v98_v29 = vld [vmem:[#allocation5 + $0xa0] sm:$0xff]  ;;  %v101_v30 = vld [vmem:[#allocation5 + $0xb8] sm:$0xff]  ;;  %v373_v32 = vpack.c.bf16 %v100_v28, %v97_v27  ;;  %v96_v33 = vld [vmem:[#allocation5 + $0x90] sm:$0xff] }
  0x2f   :  { %368 = vmatpush1.bf16.msra.mxu0 %v367_v17  ;;  %v99_v34 = vld [vmem:[#allocation5 + $0xa8] sm:$0xff]  ;;  %v405_v35 = vpack.c.bf16 %v101_v30, %v98_v29  ;;  %v106_v37 = vld [vmem:[#allocation5 + $0xe0] sm:$0xff]  ;;  %v104_v38 = vld [vmem:[#allocation5 + $0xd0] sm:$0xff]  ;;  %v51_v14 = vsub.s32 0, %v50_v13  ;;  %v55_v16 = vsub.s32 1, %v50_v13  ;;  %v59_v17 = vsub.s32 2, %v50_v13 }
  0x30   :  { %370 = vmatprep.subr.bf16.mxu0 %v369_v22  ;;  %v103_v36 = vld [vmem:[#allocation5 + $0xc8] sm:$0xff]  ;;  %v375_v40 = vpack.c.bf16 %v99_v34, %v96_v33  ;;  %v102_v42 = vld [vmem:[#allocation5 + $0xc0] sm:$0xff]  ;;  %v105_v43 = vld [vmem:[#allocation5 + $0xd8] sm:$0xff] }
  0x31   :  { %400 = vmatpush3.bf16.msra.mxu1 %v397_v18  ;;  %v107_v39 = vld [vmem:[#allocation5 + $0xe8] sm:$0xff]  ;;  %v377_v41 = vpack.c.bf16 %v106_v37, %v103_v36  ;;  %v109_v45 = vld [vmem:[#allocation5 + $0xf8] sm:$0xff]  ;;  %v112_v46 = vld [vmem:[#allocation5 + $0x110] sm:$0xff]  ;;  %v379_v49 = vpack.c.bf16 %v105_v43, %v102_v42 }
  0x32   :  { %402 = vmatprep.subr.bf16.mxu1 %v401_v26  ;;  %v409_v44 = vpack.c.bf16 %v107_v39, %v104_v38  ;;  %v110_v47 = vld [vmem:[#allocation5 + $0x100] sm:$0xff]  ;;  %v113_v48 = vld [vmem:[#allocation5 + $0x118] sm:$0xff]  ;;  %v381_v50 = vpack.c.bf16 %v112_v46, %v109_v45  ;;  %v108_v51 = vld [vmem:[#allocation5 + $0xf0] sm:$0xff] }
  0x33   :  { %372 = vmatpush1.bf16.msra.mxu0 %v371_v31  ;;  %v111_v52 = vld [vmem:[#allocation5 + $0x108] sm:$0xff]  ;;  %v76_v53 = vld [vmem:[#allocation2] sm:$0xff]  ;;  %v413_v54 = vpack.c.bf16 %v113_v48, %v110_v47  ;;  %v118_v56 = vld [vmem:[#allocation5 + $0x140] sm:$0xff] }
  0x34   :  { %374 = vmatprep.subr.bf16.mxu0 %v373_v32  ;;  %v115_v55 = vld [vmem:[#allocation5 + $0x128] sm:$0xff]  ;;  %358 = vmatprep.mubr.f32.mxu1 %v76_v53  ;;  %v116_v57 = vld [vmem:[#allocation5 + $0x130] sm:$0xff]  ;;  %v383_v59 = vpack.c.bf16 %v111_v52, %v108_v51  ;;  %v114_v61 = vld [vmem:[#allocation5 + $0x120] sm:$0xff] }
  0x35   :  { %404 = vmatpush3.bf16.msra.mxu1 %v401_v26  ;;  %v119_v58 = vld [vmem:[#allocation5 + $0x148] sm:$0xff]  ;;  %v385_v60 = vpack.c.bf16 %v118_v56, %v115_v55  ;;  %v117_v62 = vld [vmem:[#allocation5 + $0x138] sm:$0xff]  ;;  %v124_v2 = vld [vmem:[#allocation5 + $0x170] sm:$0xff] }
  0x36   :  { %406 = vmatprep.subr.bf16.mxu1 %v405_v35  ;;  %v417_v63 = vpack.c.bf16 %v119_v58, %v116_v57  ;;  %v121_v1 = vld [vmem:[#allocation5 + $0x158] sm:$0xff]  ;;  %v122_v3 = vld [vmem:[#allocation5 + $0x160] sm:$0xff]  ;;  %v387_v5 = vpack.c.bf16 %v117_v62, %v114_v61  ;;  %v120_v7 = vld [vmem:[#allocation5 + $0x150] sm:$0xff] }
  0x37   :  { %376 = vmatpush1.bf16.msra.mxu0 %v375_v40  ;;  %v125_v4 = vld [vmem:[#allocation5 + $0x178] sm:$0xff]  ;;  %v389_v6 = vpack.c.bf16 %v124_v2, %v121_v1  ;;  %v123_v8 = vld [vmem:[#allocation5 + $0x168] sm:$0xff]  ;;  %v47_v15 = vld [vmem:[%s582_s2] sm:$0x7]  ;;  %s477_s2 = scalar_lea.vmem %s296_s14, 768 }
  0x38   :  { %378 = vmatprep.subr.bf16.mxu0 %v377_v41  ;;  %v421_v9 = vpack.c.bf16 %v125_v4, %v122_v3  ;;  %v391_v10 = vpack.c.bf16 %v123_v8, %v120_v7  ;;  %v77_v11 = vld [vmem:[#allocation2 + $0x8] sm:$0xff]  ;;  %v52_v18 = vrot.slane %v47_v15, %v51_v14  ;;  %v56_v19 = vrot.slane %v47_v15, %v55_v16  ;;  %p478_p2 = scmp.ne.s32.totalorder %s296_s14, %s477_s2  ;;  %p483_p4 = scmp.lt.s32.totalorder %s477_s2, %s477_s2 }
  0x39   :  { %408 = vmatpush3.bf16.msra.mxu1 %v405_v35  ;;  %v60_v20 = vrot.slane %v47_v15, %v59_v17 }
  0x3a   :  { %410 = vmatprep.subr.bf16.mxu1 %v409_v44  ;;  %p484_p5 = por %p483_p4, %p482_p3 }
  0x3b   :  { %380 = vmatpush1.bf16.msra.mxu0 %v379_v49 }
  0x3c   :  { %382 = vmatprep.subr.bf16.mxu0 %v381_v50  ;;  %p485_p6 = pnand %p484_p5, %p478_p2 }
  0x3d   :  { %412 = vmatpush3.bf16.msra.mxu1 %v409_v44 }
  0x3e   :  { %414 = vmatprep.subr.bf16.mxu1 %v413_v54 }
  0x3f   :  { %384 = vmatpush1.bf16.msra.mxu0 %v383_v59 }
  0x40   :  { %386 = vmatprep.subr.bf16.mxu0 %v385_v60 }
  0x41   :  { %416 = vmatpush3.bf16.msra.mxu1 %v413_v54 }
  0x42   :  { %418 = vmatprep.subr.bf16.mxu1 %v417_v63 }
  0x43   :  { %388 = vmatpush1.bf16.msra.mxu0 %v387_v5 }
  0x44   :  { %390 = vmatprep.subr.bf16.mxu0 %v389_v6 }
  0x45   :  { %420 = vmatpush3.bf16.msra.mxu1 %v417_v63 }
  0x46   :  { %422 = vmatprep.subr.bf16.mxu1 %v421_v9 }
  0x47   :  { %392 = vmatpush1.bf16.msra.mxu0 %v391_v10 }
  0x49   :  { %424 = vmatpush3.bf16.msra.mxu1 %v421_v9 }
  0x4a   :  { %191 = vmatmul.mubr.f32.vlgmr.msra.gmra.mrb[0].mxu0 %v76_v53 }
  0x4b   :  { %196 = vmatprep.mubr.f32.mxu0 %v511_v0 }
  0x4c   :  { %359 = vmatmul.mubr.f32.vlgmr.msra.gmra.mrb[0].mxu1 %v77_v11 }
  0x4e   :  { %197 = vmatmul.mubr.f32.gmra.mrb[2].mxu0 %v77_v11 }
 0x11d   :  { %v192_v21 = vpop.f32.mrb[0].mxu0 }
 0x11e   :  { %v278_v22 = vadd.f32 %v192_v21, %v52_v18  ;;  %v194_v23 = vpop.f32.mrb[1].mxu0 }
 0x11f   :  { %v360_v24 = vpop.f32.mrb[0].mxu1  ;;  %v279_v25 = vadd.f32 %v194_v23, %v56_v19 }
 0x120   :  { %v283_v0 = vadd.f32 %v360_v24, %v60_v20  ;;  %v269_v26 = vpop.f32.mrb[1].mxu1  ;;  %284 = vst [vmem:[#allocation7] sm:$0xff] %v278_v22 }
 0x121   :  { %v280_v27 = vadd.f32 %v269_v26, %v60_v20  ;;  %285 = vst [vmem:[#allocation7 + $0x8] sm:$0xff] %v279_v25  ;;  %v198_v28 = vpop.f32.mrb[2].mxu0 }
 0x122   :  { %289 = vst [vmem:[#allocation7 + $0x28] sm:$0xff] %v283_v0  ;;  %v281_v29 = vadd.f32 %v198_v28, %v52_v18  ;;  %v200_v30 = vpop.f32.mrb[3].mxu0 }
 0x123   :  { %286 = vst [vmem:[#allocation7 + $0x10] sm:$0xff] %v280_v27  ;;  %v282_v31 = vadd.f32 %v200_v30, %v56_v19 }
 0x124   :  { %287 = vst [vmem:[#allocation7 + $0x18] sm:$0xff] %v281_v29 }
 0x125   :  { %288 = vst [vmem:[#allocation7 + $0x20] sm:$0xff] %v282_v31 }
 0x126   :  { %488 = shalt.err (!%p485_p6)
}
 0x127   :  { %s489_s17 = scalar_lea.hbm %s583_s3, 768 }
 0x128   :  { %p490_p7 = scmp.ne.s32.totalorder %s583_s3, %s489_s17  ;;  %p493_p8 = scmp.lt.u32.totalorder %s489_s17, %s583_s3 }
 0x12a   :  { %p495_p9 = pnand %p493_p8, %p490_p7 }
 0x12c   :  { %498 = shalt.err (!%p495_p9)
}
 0x12d   :  { %301 = dma.vmem_to_hbm [thread:$0]  %s296_s14, 768, %s583_s3, [#allocation4], %s509_s0, %s509_s0, %s510_s9  }
 0x12e   :  { %503 = dma.done.wait [#allocation4], 768  }
 0x12f   :  { %504 = vsyncadd [#allocation4], 4294966528 }
 0x130   :  { %305 = vsyncpa [#allocation3], 1 }
 0x131   :  { %306 = vsyncpa [#allocation6], 1 }
 0x132   :  { %307 = vsyncpa [#allocation4], 1 }

</bundles_post_ra>
